<compile_context>
chip_gen: v5e
topology: v5e:2x2
jax: 0.10.0
libtpu: 0.0.40
codegen_flags: <defaults>
</compile_context>

<pallas_src>
import math
from functools import partial

import jax
import jax.numpy as jnp
from jax.experimental import pallas as pl
from jax.experimental.pallas import tpu as pltpu


LANE = 128      # every feature dim is zero-padded to a multiple of the lane width
SUBLANE = 8     # f32 sublane tile; batch is padded to a multiple of this


def _pad_to(n, m):
    return ((n + m - 1) // m) * m


# ----------------------------- kernel ----------------------------------------

def _hrl_kernel(obs_ref, gumbel_ref, eps_ref, w_wide_ref, w_sq_ref, b_ref,
                out_ref, *, n_clusters):
    """Fused HRLNetwork forward. All operands VMEM-resident, no grid.

    obs_ref    : (B_P, OBS_P)   f32   zero-padded observation
    gumbel_ref : (B_P, 128)     f32   Gumbel(0,1) noise (cols >= K unused)
    eps_ref    : (B_P, 128)     f32   N(0,1) noise for the GMM sample
    w_wide_ref : (2, OBS_P, 128) bf16 [pi_k_o.W0, obs_head.W0]
    w_sq_ref   : (9, 128, 128)  bf16  [k.W1, k.W2, gmm.mu, gmm.std,
                                       obs_head.W1, lat_head.W0, lat_head.W1,
                                       shared.W_obs, shared.W_lat]
    b_ref      : (8, 128)       f32   [k.b0, k.b1, k.b2, o.b0, o.b1,
                                       l.b0, l.b1, shared.b]
    out_ref    : (4, B_P, 128)  f32   [cluster_logits, hard_onehot, latents, actions]
    """
    f32, bf16 = jnp.float32, jnp.bfloat16

    def dense(h_f32, w_bf16, bias_idx, relu=True):
        acc = (jnp.dot(h_f32.astype(bf16), w_bf16, preferred_element_type=f32)
               + b_ref[bias_idx:bias_idx + 1, :])
        return jnp.maximum(acc, 0.0) if relu else acc

    obs = obs_ref[...]                                       # (B_P, OBS_P) f32

    # ---- pi_k_o: observation -> cluster logits ------------------------------
    h = dense(obs, w_wide_ref[0], 0)
    h = dense(h, w_sq_ref[0], 1)
    logits = dense(h, w_sq_ref[1], 2, relu=False)            # (B_P, 128); cols >= K are 0

    # ---- gumbel_softmax (tau=1, soft) + hard argmax one-hot ------------------
    lane = jax.lax.broadcasted_iota(jnp.int32, logits.shape, 1)
    valid = lane < n_clusters
    y = jnp.where(valid, logits + gumbel_ref[...], -1e30)
    m = jnp.max(y, axis=-1, keepdims=True)
    e = jnp.exp(y - m)
    clusters = e * pl.reciprocal(jnp.sum(e, axis=-1, keepdims=True), approx=True)
    # hard one-hot of argmax (ties have probability zero with continuous noise)
    onehot = (clusters >= jnp.max(clusters, axis=-1, keepdims=True)).astype(f32)

    # ---- pi_z_k: sample from the selected mixture component -----------------
    # z = mu_k + std_k * eps  — cluster-id gather realized as onehot @ table
    oh_b = onehot.astype(bf16)
    mu = jnp.dot(oh_b, w_sq_ref[2], preferred_element_type=f32)
    std = jnp.dot(oh_b, w_sq_ref[3], preferred_element_type=f32)
    latents = mu + std * eps_ref[...]                        # pad lanes: std == 0 -> 0

    # ---- pi_a_o_z: MultiHeadMLP({observations, latents}) -> actions ---------
    h_o = dense(obs, w_wide_ref[1], 3)
    h_o = dense(h_o, w_sq_ref[4], 4)
    h_l = dense(latents, w_sq_ref[5], 5)
    h_l = dense(h_l, w_sq_ref[6], 6)
    # shared output layer on concat([h_o, h_l]) realized as a split matmul
    actions = (jnp.dot(h_o.astype(bf16), w_sq_ref[7], preferred_element_type=f32)
               + jnp.dot(h_l.astype(bf16), w_sq_ref[8], preferred_element_type=f32)
               + b_ref[7:8, :])

    # ---- single lane-dense output slab ---------------------------------------
    out_ref[0, :, :] = logits
    out_ref[1, :, :] = onehot
    out_ref[2, :, :] = latents
    out_ref[3, :, :] = actions


# ----------------------------- parameter init --------------------------------

def _linear_init(key, fan_in, fan_out):
    bound = 1.0 / math.sqrt(fan_in)
    kw, kb = jax.random.split(key)
    w = jax.random.uniform(kw, (fan_in, fan_out), jnp.float32, -bound, bound)
    b = jax.random.uniform(kb, (fan_out,), jnp.float32, -bound, bound)
    return w, b


def _pad_w(w, rows, cols):
    return jnp.zeros((rows, cols), jnp.float32).at[:w.shape[0], :w.shape[1]].set(w)


def _pad_b(b, cols):
    return jnp.zeros((cols,), jnp.float32).at[:b.shape[0]].set(b)


def init_hrl_params(key, *, observation_size=150, n_clusters=10, latent_dim=10,
                    action_dim=2, pi_k_o_hidden=(128, 64), head_sizes=(25, 10)):
    obs_p = _pad_to(observation_size, LANE)
    keys = iter(jax.random.split(key, 16))

    # pi_k_o: obs -> hidden -> n_clusters (logits)
    k_w0, k_b0 = _linear_init(next(keys), observation_size, pi_k_o_hidden[0])
    k_w1, k_b1 = _linear_init(next(keys), pi_k_o_hidden[0], pi_k_o_hidden[1])
    k_w2, k_b2 = _linear_init(next(keys), pi_k_o_hidden[1], n_clusters)

    # pi_z_k: per-cluster Gaussian parameters
    gmm_mu = jax.random.normal(next(keys), (n_clusters, latent_dim), jnp.float32)
    gmm_std = jnp.ones((n_clusters, latent_dim), jnp.float32)

    # pi_a_o_z: independent (25, 10) heads on observations / latents + shared out
    o_w0, o_b0 = _linear_init(next(keys), observation_size, head_sizes[0])
    o_w1, o_b1 = _linear_init(next(keys), head_sizes[0], head_sizes[1])
    l_w0, l_b0 = _linear_init(next(keys), latent_dim, head_sizes[0])
    l_w1, l_b1 = _linear_init(next(keys), head_sizes[0], head_sizes[1])
    s_w, s_b = _linear_init(next(keys), 2 * head_sizes[1], action_dim)
    s_w_obs, s_w_lat = s_w[:head_sizes[1]], s_w[head_sizes[1]:]

    w_wide = jnp.stack([_pad_w(k_w0, obs_p, LANE),
                        _pad_w(o_w0, obs_p, LANE)]).astype(jnp.bfloat16)
    w_sq = jnp.stack([_pad_w(w, LANE, LANE) for w in
                      (k_w1, k_w2, gmm_mu, gmm_std, o_w1, l_w0, l_w1,
                       s_w_obs, s_w_lat)]).astype(jnp.bfloat16)
    biases = jnp.stack([_pad_b(b, LANE) for b in
                        (k_b0, k_b1, k_b2, o_b0, o_b1, l_b0, l_b1, s_b)])
    return {"w_wide": w_wide, "w_sq": w_sq, "b": biases}


# ----------------------------- wrapper ----------------------------------------

@partial(jax.jit, static_argnames=("n_clusters", "latent_dim", "action_dim"))
def hrl_forward(observation, noise_key, params, *, n_clusters=10, latent_dim=10,
                action_dim=2):
    B, obs_size = observation.shape
    b_p = _pad_to(max(B, SUBLANE), SUBLANE)
    obs_p_dim = _pad_to(obs_size, LANE)

    obs_p = jnp.zeros((b_p, obs_p_dim), jnp.float32).at[:B, :obs_size].set(
        observation.astype(jnp.float32))

    k_g, k_e = jax.random.split(noise_key)
    gumbel = jax.random.gumbel(k_g, (b_p, LANE), jnp.float32)
    eps = jax.random.normal(k_e, (b_p, LANE), jnp.float32)

    vmem = pl.BlockSpec(memory_space=pltpu.MemorySpace.VMEM)
    slab = pl.pallas_call(
        partial(_hrl_kernel, n_clusters=n_clusters),
        out_shape=jax.ShapeDtypeStruct((4, b_p, LANE), jnp.float32),
        in_specs=[vmem] * 6,
        out_specs=vmem,
    )(obs_p, gumbel, eps, params["w_wide"], params["w_sq"], params["b"])

    cluster_logits = slab[0, :B, :n_clusters]
    cluster_ids = jnp.argmax(slab[1, :B, :n_clusters], axis=-1).astype(jnp.int32)
    latents = slab[2, :B, :latent_dim]
    actions = slab[3, :B, :action_dim]
    # PyTorch forward returns `actions`; the dict mirrors set_outputs().
    return {"actions": actions, "cluster_ids": cluster_ids,
            "latents": latents, "cluster_probs": cluster_logits}


# ----------------------------- main -------------------------------------------

if __name__ == "__main__":
    key = jax.random.PRNGKey(0)
    k_obs, k_noise, k_params = jax.random.split(key, 3)

    B, OBS = 2, 150          # observation_size default
    K, L, A = 10, 10, 2      # n_clusters, latent_dim, action_dim defaults

    observation = jax.random.normal(k_obs, (B, OBS), jnp.float32)
    params = init_hrl_params(k_params, observation_size=OBS, n_clusters=K,
                             latent_dim=L, action_dim=A)

    out = hrl_forward(observation, k_noise, params,
                      n_clusters=K, latent_dim=L, action_dim=A)
    jax.block_until_ready(out)

    assert out["actions"].shape == (B, A)
    assert out["cluster_ids"].shape == (B,)
    assert out["latents"].shape == (B, L)
    assert out["cluster_probs"].shape == (B, K)
    assert bool(jnp.all((out["cluster_ids"] >= 0) & (out["cluster_ids"] < K)))
    assert bool(jnp.all(jnp.isfinite(out["actions"])))
    assert bool(jnp.all(jnp.isfinite(out["latents"])))

    print("KERNEL_OK")
</pallas_src>

<mosaic_0001>
module attributes {stable_mosaic.version = 11 : i64} {
  func.func @_hrl_kernel(%arg0: memref<8x256xf32, #tpu.memory_space<vmem>>, %arg1: memref<8x128xf32, #tpu.memory_space<vmem>>, %arg2: memref<8x128xf32, #tpu.memory_space<vmem>>, %arg3: memref<2x256x128xbf16, #tpu.memory_space<vmem>>, %arg4: memref<9x128x128xbf16, #tpu.memory_space<vmem>>, %arg5: memref<8x128xf32, #tpu.memory_space<vmem>>, %arg6: memref<4x8x128xf32, #tpu.memory_space<vmem>>) attributes {dimension_semantics = [], scalar_prefetch = 0 : i64, scratch_operands = 0 : i64, tpu.core_type = #tpu.core_type<tc>} {
    %c0 = arith.constant 0 : index
    %c0_0 = arith.constant 0 : index
    %0 = vector.load %arg0[%c0, %c0_0] : memref<8x256xf32, #tpu.memory_space<vmem>>, vector<8x256xf32>
    %c0_1 = arith.constant 0 : index
    %c0_2 = arith.constant 0 : index
    %c0_3 = arith.constant 0 : index
    %1 = vector.load %arg3[%c0_1, %c0_2, %c0_3] : memref<2x256x128xbf16, #tpu.memory_space<vmem>>, vector<1x256x128xbf16>
    %2 = vector.shape_cast %1 : vector<1x256x128xbf16> to vector<256x128xbf16>
    %3 = arith.truncf %0 : vector<8x256xf32> to vector<8x256xbf16>
    %cst = arith.constant dense<0.000000e+00> : vector<8x128xf32>
    %4 = tpu.matmul %3, %2, %cst {dimension_numbers = #tpu.dot_dimension_numbers<[1], [0], [0], [1], [0, 0, 1, 1], [], []>} : vector<8x256xbf16>, vector<256x128xbf16>, vector<8x128xf32> -> vector<8x128xf32>
    %c0_4 = arith.constant 0 : index
    %c0_5 = arith.constant 0 : index
    %5 = vector.load %arg5[%c0_4, %c0_5] : memref<8x128xf32, #tpu.memory_space<vmem>>, vector<1x128xf32>
    %6 = vector.broadcast %5 : vector<1x128xf32> to vector<8x128xf32>
    %7 = arith.addf %4, %6 : vector<8x128xf32>
    %cst_6 = arith.constant 0.000000e+00 : f32
    %8 = vector.broadcast %cst_6 : f32 to vector<8x128xf32>
    %9 = arith.maximumf %7, %8 : vector<8x128xf32>
    %c0_7 = arith.constant 0 : index
    %c0_8 = arith.constant 0 : index
    %c0_9 = arith.constant 0 : index
    %10 = vector.load %arg4[%c0_7, %c0_8, %c0_9] : memref<9x128x128xbf16, #tpu.memory_space<vmem>>, vector<1x128x128xbf16>
    %11 = vector.shape_cast %10 : vector<1x128x128xbf16> to vector<128x128xbf16>
    %12 = arith.truncf %9 : vector<8x128xf32> to vector<8x128xbf16>
    %cst_10 = arith.constant dense<0.000000e+00> : vector<8x128xf32>
    %13 = tpu.matmul %12, %11, %cst_10 {dimension_numbers = #tpu.dot_dimension_numbers<[1], [0], [0], [1], [0, 0, 1, 1], [], []>} : vector<8x128xbf16>, vector<128x128xbf16>, vector<8x128xf32> -> vector<8x128xf32>
    %c1 = arith.constant 1 : index
    %c0_11 = arith.constant 0 : index
    %14 = vector.load %arg5[%c1, %c0_11] : memref<8x128xf32, #tpu.memory_space<vmem>>, vector<1x128xf32>
    %15 = vector.broadcast %14 : vector<1x128xf32> to vector<8x128xf32>
    %16 = arith.addf %13, %15 : vector<8x128xf32>
    %cst_12 = arith.constant 0.000000e+00 : f32
    %17 = vector.broadcast %cst_12 : f32 to vector<8x128xf32>
    %18 = arith.maximumf %16, %17 : vector<8x128xf32>
    %c1_13 = arith.constant 1 : index
    %c0_14 = arith.constant 0 : index
    %c0_15 = arith.constant 0 : index
    %19 = vector.load %arg4[%c1_13, %c0_14, %c0_15] : memref<9x128x128xbf16, #tpu.memory_space<vmem>>, vector<1x128x128xbf16>
    %20 = vector.shape_cast %19 : vector<1x128x128xbf16> to vector<128x128xbf16>
    %21 = arith.truncf %18 : vector<8x128xf32> to vector<8x128xbf16>
    %cst_16 = arith.constant dense<0.000000e+00> : vector<8x128xf32>
    %22 = tpu.matmul %21, %20, %cst_16 {dimension_numbers = #tpu.dot_dimension_numbers<[1], [0], [0], [1], [0, 0, 1, 1], [], []>} : vector<8x128xbf16>, vector<128x128xbf16>, vector<8x128xf32> -> vector<8x128xf32>
    %c2 = arith.constant 2 : index
    %c0_17 = arith.constant 0 : index
    %23 = vector.load %arg5[%c2, %c0_17] : memref<8x128xf32, #tpu.memory_space<vmem>>, vector<1x128xf32>
    %24 = vector.broadcast %23 : vector<1x128xf32> to vector<8x128xf32>
    %25 = arith.addf %22, %24 : vector<8x128xf32>
    %26 = tpu.iota {dimensions = array<i32: 1>} : vector<8x128xi32>
    %c10_i32 = arith.constant 10 : i32
    %27 = vector.broadcast %c10_i32 : i32 to vector<8x128xi32>
    %28 = arith.cmpi slt, %26, %27 : vector<8x128xi32>
    %c0_18 = arith.constant 0 : index
    %c0_19 = arith.constant 0 : index
    %29 = vector.load %arg1[%c0_18, %c0_19] : memref<8x128xf32, #tpu.memory_space<vmem>>, vector<8x128xf32>
    %30 = arith.addf %25, %29 : vector<8x128xf32>
    %cst_20 = arith.constant -1.000000e+30 : f32
    %31 = vector.broadcast %cst_20 : f32 to vector<8x128xf32>
    %32 = arith.select %28, %30, %31 : vector<8x128xi1>, vector<8x128xf32>
    %cst_21 = arith.constant dense<0xFF800000> : vector<8xf32>
    %33 = vector.multi_reduction <maximumf>, %32, %cst_21 [1] : vector<8x128xf32> to vector<8xf32>
    %34 = vector.shape_cast %33 : vector<8xf32> to vector<8x1xf32>
    %35 = vector.broadcast %34 : vector<8x1xf32> to vector<8x128xf32>
    %36 = arith.subf %32, %35 : vector<8x128xf32>
    %37 = math.exp %36 : vector<8x128xf32>
    %cst_22 = arith.constant dense<0.000000e+00> : vector<8xf32>
    %38 = vector.multi_reduction <add>, %37, %cst_22 [1] : vector<8x128xf32> to vector<8xf32>
    %39 = vector.shape_cast %38 : vector<8xf32> to vector<8x1xf32>
    %40 = tpu.reciprocal %39 {approx = true} : vector<8x1xf32> -> vector<8x1xf32>
    %41 = vector.broadcast %40 : vector<8x1xf32> to vector<8x128xf32>
    %42 = arith.mulf %37, %41 : vector<8x128xf32>
    %cst_23 = arith.constant dense<0xFF800000> : vector<8xf32>
    %43 = vector.multi_reduction <maximumf>, %42, %cst_23 [1] : vector<8x128xf32> to vector<8xf32>
    %44 = vector.shape_cast %43 : vector<8xf32> to vector<8x1xf32>
    %45 = vector.broadcast %44 : vector<8x1xf32> to vector<8x128xf32>
    %46 = arith.cmpf oge, %42, %45 : vector<8x128xf32>
    %47 = arith.extui %46 : vector<8x128xi1> to vector<8x128xi32>
    %48 = arith.sitofp %47 : vector<8x128xi32> to vector<8x128xf32>
    %49 = arith.truncf %48 : vector<8x128xf32> to vector<8x128xbf16>
    %c2_24 = arith.constant 2 : index
    %c0_25 = arith.constant 0 : index
    %c0_26 = arith.constant 0 : index
    %50 = vector.load %arg4[%c2_24, %c0_25, %c0_26] : memref<9x128x128xbf16, #tpu.memory_space<vmem>>, vector<1x128x128xbf16>
    %51 = vector.shape_cast %50 : vector<1x128x128xbf16> to vector<128x128xbf16>
    %cst_27 = arith.constant dense<0.000000e+00> : vector<8x128xf32>
    %52 = tpu.matmul %49, %51, %cst_27 {dimension_numbers = #tpu.dot_dimension_numbers<[1], [0], [0], [1], [0, 0, 1, 1], [], []>} : vector<8x128xbf16>, vector<128x128xbf16>, vector<8x128xf32> -> vector<8x128xf32>
    %c3 = arith.constant 3 : index
    %c0_28 = arith.constant 0 : index
    %c0_29 = arith.constant 0 : index
    %53 = vector.load %arg4[%c3, %c0_28, %c0_29] : memref<9x128x128xbf16, #tpu.memory_space<vmem>>, vector<1x128x128xbf16>
    %54 = vector.shape_cast %53 : vector<1x128x128xbf16> to vector<128x128xbf16>
    %cst_30 = arith.constant dense<0.000000e+00> : vector<8x128xf32>
    %55 = tpu.matmul %49, %54, %cst_30 {dimension_numbers = #tpu.dot_dimension_numbers<[1], [0], [0], [1], [0, 0, 1, 1], [], []>} : vector<8x128xbf16>, vector<128x128xbf16>, vector<8x128xf32> -> vector<8x128xf32>
    %c0_31 = arith.constant 0 : index
    %c0_32 = arith.constant 0 : index
    %56 = vector.load %arg2[%c0_31, %c0_32] : memref<8x128xf32, #tpu.memory_space<vmem>>, vector<8x128xf32>
    %57 = arith.mulf %55, %56 : vector<8x128xf32>
    %58 = arith.addf %52, %57 : vector<8x128xf32>
    %c1_33 = arith.constant 1 : index
    %c0_34 = arith.constant 0 : index
    %c0_35 = arith.constant 0 : index
    %59 = vector.load %arg3[%c1_33, %c0_34, %c0_35] : memref<2x256x128xbf16, #tpu.memory_space<vmem>>, vector<1x256x128xbf16>
    %60 = vector.shape_cast %59 : vector<1x256x128xbf16> to vector<256x128xbf16>
    %61 = arith.truncf %0 : vector<8x256xf32> to vector<8x256xbf16>
    %cst_36 = arith.constant dense<0.000000e+00> : vector<8x128xf32>
    %62 = tpu.matmul %61, %60, %cst_36 {dimension_numbers = #tpu.dot_dimension_numbers<[1], [0], [0], [1], [0, 0, 1, 1], [], []>} : vector<8x256xbf16>, vector<256x128xbf16>, vector<8x128xf32> -> vector<8x128xf32>
    %c3_37 = arith.constant 3 : index
    %c0_38 = arith.constant 0 : index
    %63 = vector.load %arg5[%c3_37, %c0_38] : memref<8x128xf32, #tpu.memory_space<vmem>>, vector<1x128xf32>
    %64 = vector.broadcast %63 : vector<1x128xf32> to vector<8x128xf32>
    %65 = arith.addf %62, %64 : vector<8x128xf32>
    %cst_39 = arith.constant 0.000000e+00 : f32
    %66 = vector.broadcast %cst_39 : f32 to vector<8x128xf32>
    %67 = arith.maximumf %65, %66 : vector<8x128xf32>
    %c4 = arith.constant 4 : index
    %c0_40 = arith.constant 0 : index
    %c0_41 = arith.constant 0 : index
    %68 = vector.load %arg4[%c4, %c0_40, %c0_41] : memref<9x128x128xbf16, #tpu.memory_space<vmem>>, vector<1x128x128xbf16>
    %69 = vector.shape_cast %68 : vector<1x128x128xbf16> to vector<128x128xbf16>
    %70 = arith.truncf %67 : vector<8x128xf32> to vector<8x128xbf16>
    %cst_42 = arith.constant dense<0.000000e+00> : vector<8x128xf32>
    %71 = tpu.matmul %70, %69, %cst_42 {dimension_numbers = #tpu.dot_dimension_numbers<[1], [0], [0], [1], [0, 0, 1, 1], [], []>} : vector<8x128xbf16>, vector<128x128xbf16>, vector<8x128xf32> -> vector<8x128xf32>
    %c4_43 = arith.constant 4 : index
    %c0_44 = arith.constant 0 : index
    %72 = vector.load %arg5[%c4_43, %c0_44] : memref<8x128xf32, #tpu.memory_space<vmem>>, vector<1x128xf32>
    %73 = vector.broadcast %72 : vector<1x128xf32> to vector<8x128xf32>
    %74 = arith.addf %71, %73 : vector<8x128xf32>
    %cst_45 = arith.constant 0.000000e+00 : f32
    %75 = vector.broadcast %cst_45 : f32 to vector<8x128xf32>
    %76 = arith.maximumf %74, %75 : vector<8x128xf32>
    %c5 = arith.constant 5 : index
    %c0_46 = arith.constant 0 : index
    %c0_47 = arith.constant 0 : index
    %77 = vector.load %arg4[%c5, %c0_46, %c0_47] : memref<9x128x128xbf16, #tpu.memory_space<vmem>>, vector<1x128x128xbf16>
    %78 = vector.shape_cast %77 : vector<1x128x128xbf16> to vector<128x128xbf16>
    %79 = arith.truncf %58 : vector<8x128xf32> to vector<8x128xbf16>
    %cst_48 = arith.constant dense<0.000000e+00> : vector<8x128xf32>
    %80 = tpu.matmul %79, %78, %cst_48 {dimension_numbers = #tpu.dot_dimension_numbers<[1], [0], [0], [1], [0, 0, 1, 1], [], []>} : vector<8x128xbf16>, vector<128x128xbf16>, vector<8x128xf32> -> vector<8x128xf32>
    %c5_49 = arith.constant 5 : index
    %c0_50 = arith.constant 0 : index
    %81 = vector.load %arg5[%c5_49, %c0_50] : memref<8x128xf32, #tpu.memory_space<vmem>>, vector<1x128xf32>
    %82 = vector.broadcast %81 : vector<1x128xf32> to vector<8x128xf32>
    %83 = arith.addf %80, %82 : vector<8x128xf32>
    %cst_51 = arith.constant 0.000000e+00 : f32
    %84 = vector.broadcast %cst_51 : f32 to vector<8x128xf32>
    %85 = arith.maximumf %83, %84 : vector<8x128xf32>
    %c6 = arith.constant 6 : index
    %c0_52 = arith.constant 0 : index
    %c0_53 = arith.constant 0 : index
    %86 = vector.load %arg4[%c6, %c0_52, %c0_53] : memref<9x128x128xbf16, #tpu.memory_space<vmem>>, vector<1x128x128xbf16>
    %87 = vector.shape_cast %86 : vector<1x128x128xbf16> to vector<128x128xbf16>
    %88 = arith.truncf %85 : vector<8x128xf32> to vector<8x128xbf16>
    %cst_54 = arith.constant dense<0.000000e+00> : vector<8x128xf32>
    %89 = tpu.matmul %88, %87, %cst_54 {dimension_numbers = #tpu.dot_dimension_numbers<[1], [0], [0], [1], [0, 0, 1, 1], [], []>} : vector<8x128xbf16>, vector<128x128xbf16>, vector<8x128xf32> -> vector<8x128xf32>
    %c6_55 = arith.constant 6 : index
    %c0_56 = arith.constant 0 : index
    %90 = vector.load %arg5[%c6_55, %c0_56] : memref<8x128xf32, #tpu.memory_space<vmem>>, vector<1x128xf32>
    %91 = vector.broadcast %90 : vector<1x128xf32> to vector<8x128xf32>
    %92 = arith.addf %89, %91 : vector<8x128xf32>
    %cst_57 = arith.constant 0.000000e+00 : f32
    %93 = vector.broadcast %cst_57 : f32 to vector<8x128xf32>
    %94 = arith.maximumf %92, %93 : vector<8x128xf32>
    %95 = arith.truncf %76 : vector<8x128xf32> to vector<8x128xbf16>
    %c7 = arith.constant 7 : index
    %c0_58 = arith.constant 0 : index
    %c0_59 = arith.constant 0 : index
    %96 = vector.load %arg4[%c7, %c0_58, %c0_59] : memref<9x128x128xbf16, #tpu.memory_space<vmem>>, vector<1x128x128xbf16>
    %97 = vector.shape_cast %96 : vector<1x128x128xbf16> to vector<128x128xbf16>
    %cst_60 = arith.constant dense<0.000000e+00> : vector<8x128xf32>
    %98 = tpu.matmul %95, %97, %cst_60 {dimension_numbers = #tpu.dot_dimension_numbers<[1], [0], [0], [1], [0, 0, 1, 1], [], []>} : vector<8x128xbf16>, vector<128x128xbf16>, vector<8x128xf32> -> vector<8x128xf32>
    %99 = arith.truncf %94 : vector<8x128xf32> to vector<8x128xbf16>
    %c8 = arith.constant 8 : index
    %c0_61 = arith.constant 0 : index
    %c0_62 = arith.constant 0 : index
    %100 = vector.load %arg4[%c8, %c0_61, %c0_62] : memref<9x128x128xbf16, #tpu.memory_space<vmem>>, vector<1x128x128xbf16>
    %101 = vector.shape_cast %100 : vector<1x128x128xbf16> to vector<128x128xbf16>
    %cst_63 = arith.constant dense<0.000000e+00> : vector<8x128xf32>
    %102 = tpu.matmul %99, %101, %cst_63 {dimension_numbers = #tpu.dot_dimension_numbers<[1], [0], [0], [1], [0, 0, 1, 1], [], []>} : vector<8x128xbf16>, vector<128x128xbf16>, vector<8x128xf32> -> vector<8x128xf32>
    %103 = arith.addf %98, %102 : vector<8x128xf32>
    %c7_64 = arith.constant 7 : index
    %c0_65 = arith.constant 0 : index
    %104 = vector.load %arg5[%c7_64, %c0_65] : memref<8x128xf32, #tpu.memory_space<vmem>>, vector<1x128xf32>
    %105 = vector.broadcast %104 : vector<1x128xf32> to vector<8x128xf32>
    %106 = arith.addf %103, %105 : vector<8x128xf32>
    %c0_66 = arith.constant 0 : index
    %c0_67 = arith.constant 0 : index
    %c0_68 = arith.constant 0 : index
    %107 = vector.load %arg6[%c0_66, %c0_67, %c0_68] : memref<4x8x128xf32, #tpu.memory_space<vmem>>, vector<1x8x128xf32>
    %108 = vector.shape_cast %107 : vector<1x8x128xf32> to vector<8x128xf32>
    %109 = vector.shape_cast %25 : vector<8x128xf32> to vector<1x8x128xf32>
    tpu.vector_store %arg6[%c0_66, %c0_67, %c0_68], %109 {strides = array<i32>} : memref<4x8x128xf32, #tpu.memory_space<vmem>>, vector<1x8x128xf32>,
    %c1_69 = arith.constant 1 : index
    %c0_70 = arith.constant 0 : index
    %c0_71 = arith.constant 0 : index
    %110 = vector.load %arg6[%c1_69, %c0_70, %c0_71] : memref<4x8x128xf32, #tpu.memory_space<vmem>>, vector<1x8x128xf32>
    %111 = vector.shape_cast %110 : vector<1x8x128xf32> to vector<8x128xf32>
    %112 = vector.shape_cast %48 : vector<8x128xf32> to vector<1x8x128xf32>
    tpu.vector_store %arg6[%c1_69, %c0_70, %c0_71], %112 {strides = array<i32>} : memref<4x8x128xf32, #tpu.memory_space<vmem>>, vector<1x8x128xf32>,
    %c2_72 = arith.constant 2 : index
    %c0_73 = arith.constant 0 : index
    %c0_74 = arith.constant 0 : index
    %113 = vector.load %arg6[%c2_72, %c0_73, %c0_74] : memref<4x8x128xf32, #tpu.memory_space<vmem>>, vector<1x8x128xf32>
    %114 = vector.shape_cast %113 : vector<1x8x128xf32> to vector<8x128xf32>
    %115 = vector.shape_cast %58 : vector<8x128xf32> to vector<1x8x128xf32>
    tpu.vector_store %arg6[%c2_72, %c0_73, %c0_74], %115 {strides = array<i32>} : memref<4x8x128xf32, #tpu.memory_space<vmem>>, vector<1x8x128xf32>,
    %c3_75 = arith.constant 3 : index
    %c0_76 = arith.constant 0 : index
    %c0_77 = arith.constant 0 : index
    %116 = vector.load %arg6[%c3_75, %c0_76, %c0_77] : memref<4x8x128xf32, #tpu.memory_space<vmem>>, vector<1x8x128xf32>
    %117 = vector.shape_cast %116 : vector<1x8x128xf32> to vector<8x128xf32>
    %118 = vector.shape_cast %106 : vector<8x128xf32> to vector<1x8x128xf32>
    tpu.vector_store %arg6[%c3_75, %c0_76, %c0_77], %118 {strides = array<i32>} : memref<4x8x128xf32, #tpu.memory_space<vmem>>, vector<1x8x128xf32>,
    return
  }
}

</mosaic_0001>

<bundles_post_ra>
// kernel: hrl_forward.3
= control target key start
LH: loop header
LB: loop body
LE: loop exit
PB: predicated region body
PF: predicated region fallthrough
CT: control target
= control target key end

     0   :  { %11 = vsyncpa [#allocation3], 0  ;;  %s1836_s0 = inlined_call_operand.vmem [shape: f32[8,256], index: 0, kind: input, shape index: {}]   ;;  %s1837_s1 = inlined_call_operand.vmem [shape: f32[8,128], index: 1, kind: input, shape index: {}]   ;;  %s1838_s2 = inlined_call_operand.vmem [shape: f32[8,128], index: 2, kind: input, shape index: {}]   ;;  %s1839_s3 = inlined_call_operand.hbm [shape: bf16[2,256,128], index: 3, kind: input, shape index: {}]   ;;  %s1840_s4 = inlined_call_operand.hbm [shape: bf16[9,128,128], index: 4, kind: input, shape index: {}]   ;;  %s1841_s5 = inlined_call_operand.vmem [shape: f32[8,128], index: 5, kind: input, shape index: {}]   ;;  %s1842_s6 = inlined_call_operand.vmem [shape: f32[4,8,128], index: 6, kind: output, shape index: {}]  }
   0x1   :  { %s23_s23 = sshll.u32 %s1839_s3, 4  ;;  %s24_s23 = int_to_ptr.hbm [resolvable:$true] %s23_s23 }
   0x2   :  { %12 = vsyncpa [#allocation5], 0  ;;  %s1733_s24 = smov [#allocation2]   ;;  %s36_s28 = sshll.u32 %s1840_s4, 4  ;;  %s37_s28 = int_to_ptr.hbm [resolvable:$true] %s36_s28 }
   0x3   :  { %s25_s25 = sshll.u32 %s1733_s24, 4  ;;  %s1734_s29 = smov 64   ;;  %s26_s25 = int_to_ptr.vmem [resolvable:$true] %s25_s25 }
   0x4   :  { %s1735_s30 = smov 4   ;;  %s1736_s7 = smov [#allocation4]  }
   0x5   :  { %31 = dma.hbm_to_vmem [thread:$0]  %s24_s23, 4096, %s26_s25, [#allocation3], %s1734_s29, %s1734_s29, %s1735_s30  }
   0x6   :  { %s38_s8 = sshll.u32 %s1736_s7, 4  ;;  %s39_s8 = int_to_ptr.vmem [resolvable:$true] %s38_s8 }
   0x7   :  { %44 = dma.hbm_to_vmem [thread:$0]  %s37_s28, 9216, %s39_s8, [#allocation5], %s1734_s29, %s1734_s29, %s1735_s30  }
   0x8   :  { %1729 = dma.done.wait [#allocation3], 4096  }
   0x9   :  { %1730 = vsyncadd [#allocation3], 4294963200 }
   0xa   :  { %1731 = dma.done.wait [#allocation5], 9216  }
   0xb   :  { %1732 = vsyncadd [#allocation5], 4294958080  ;;  %v1566_v0 = vld [vmem:[#allocation2 + $0x38] sm:$0xff]  ;;  %v1565_v2 = vld [vmem:[#allocation2 + $0x30] sm:$0xff]  ;;  %v378_v51 = vlaneseq }
   0xc   :  { %v1574_v1 = vld [vmem:[#allocation2 + $0x78] sm:$0xff]  ;;  %189 = vmatpush.bf16.msra.mxu0 %v1566_v0  ;;  %v1573_v3 = vld [vmem:[#allocation2 + $0x70] sm:$0xff]  ;;  %v1564_v4 = vld [vmem:[#allocation2 + $0x28] sm:$0xff] }
   0xd   :  { %202 = vmatpush.bf16.msra.mxu1 %v1574_v1  ;;  %v1572_v5 = vld [vmem:[#allocation2 + $0x68] sm:$0xff]  ;;  %v1582_v6 = vld [vmem:[#allocation4 + $0x38] sm:$0xff]  ;;  %v1563_v7 = vld [vmem:[#allocation2 + $0x20] sm:$0xff]  ;;  %v379_v53 = vand.u32 127, %v378_v51 }
   0xe   :  { %v1571_v8 = vld [vmem:[#allocation2 + $0x60] sm:$0xff]  ;;  %283 = vmatpush.bf16.msra.mxu2 %v1582_v6  ;;  %v1581_v9 = vld [vmem:[#allocation4 + $0x30] sm:$0xff]  ;;  %v1580_v10 = vld [vmem:[#allocation4 + $0x28] sm:$0xff] }
   0xf   :  { %v1562_v11 = vld [vmem:[#allocation2 + $0x18] sm:$0xff]  ;;  %v1579_v13 = vld [vmem:[#allocation4 + $0x20] sm:$0xff]  ;;  %v1561_v14 = vld [vmem:[#allocation2 + $0x10] sm:$0xff]  ;;  %vm380_vm0 = vcmp.lt.s32.totalorder %v379_v53, 10 }
  0x10   :  { %190 = vmatpush.bf16.msra.mxu0 %v1565_v2  ;;  %v1570_v12 = vld [vmem:[#allocation2 + $0x58] sm:$0xff]  ;;  %v1569_v15 = vld [vmem:[#allocation2 + $0x50] sm:$0xff]  ;;  %v1560_v17 = vld [vmem:[#allocation2 + $0x8] sm:$0xff] }
  0x11   :  { %203 = vmatpush.bf16.msra.mxu1 %v1573_v3  ;;  %v1578_v16 = vld [vmem:[#allocation4 + $0x18] sm:$0xff]  ;;  %v1568_v18 = vld [vmem:[#allocation2 + $0x48] sm:$0xff]  ;;  %v1577_v19 = vld [vmem:[#allocation4 + $0x10] sm:$0xff] }
  0x12   :  { %284 = vmatpush.bf16.msra.mxu2 %v1581_v9  ;;  %v1559_v20 = vld [vmem:[#allocation2] sm:$0xff]  ;;  %v56_v23 = vld [vmem:[%s1836_s0 + $0x8] sm:$0xff]  ;;  %v1590_v28 = vld [vmem:[#allocation4 + $0x78] sm:$0xff] }
  0x13   :  { %v1567_v21 = vld [vmem:[#allocation2 + $0x40] sm:$0xff]  ;;  %v1788_v25 = vpack.c.bf16 %v56_v23, %v56_v23  ;;  %v1576_v26 = vld [vmem:[#allocation4 + $0x8] sm:$0xff]  ;;  %365 = vmatpush.bf16.msra.mxu3 %v1590_v28  ;;  %v1589_v29 = vld [vmem:[#allocation4 + $0x70] sm:$0xff] }
  0x14   :  { %191 = vmatpush.bf16.msra.mxu0 %v1564_v4  ;;  %v55_v22 = vld [vmem:[%s1836_s0] sm:$0xff]  ;;  %v1588_v30 = vld [vmem:[#allocation4 + $0x68] sm:$0xff]  ;;  %v1586_v32 = vld [vmem:[#allocation4 + $0x58] sm:$0xff] }
  0x15   :  { %204 = vmatpush.bf16.msra.mxu1 %v1572_v5  ;;  %v1786_v24 = vpack.c.bf16 %v55_v22, %v55_v22  ;;  %v1575_v27 = vld [vmem:[#allocation4] sm:$0xff]  ;;  %v1585_v33 = vld [vmem:[#allocation4 + $0x50] sm:$0xff]  ;;  %v1584_v43 = vld [vmem:[#allocation4 + $0x48] sm:$0xff] }
  0x16   :  { %285 = vmatpush.bf16.msra.mxu2 %v1580_v10  ;;  %v1587_v31 = vld [vmem:[#allocation4 + $0x60] sm:$0xff]  ;;  %v1606_v0 = vld [vmem:[#allocation4 + $0xf8] sm:$0xff]  ;;  %v1605_v2 = vld [vmem:[#allocation4 + $0xf0] sm:$0xff] }
  0x17   :  { %366 = vmatpush.bf16.msra.mxu3 %v1589_v29  ;;  %v1669_v34 = vld [vmem:[%s1841_s5] ss:$0 sm:$0xff]  ;;  %v1670_v45 = vld [vmem:[%s1841_s5 + $0x1] ss:$0 sm:$0xff]  ;;  %v1671_v52 = vld [vmem:[%s1841_s5 + $0x2] ss:$0 sm:$0xff] }
  0x18   :  { %192 = vmatpush.bf16.msra.mxu0 %v1563_v7  ;;  %v1583_v44 = vld [vmem:[#allocation4 + $0x40] sm:$0xff]  ;;  %v1598_v1 = vld [vmem:[#allocation4 + $0xb8] sm:$0xff]  ;;  %v1597_v3 = vld [vmem:[#allocation4 + $0xb0] sm:$0xff] }
  0x19   :  { %205 = vmatpush.bf16.msra.mxu1 %v1571_v8  ;;  %v381_v55 = vld [vmem:[%s1837_s1] sm:$0xff]  ;;  %v1604_v4 = vld [vmem:[#allocation4 + $0xe8] sm:$0xff]  ;;  %v1602_v8 = vld [vmem:[#allocation4 + $0xd8] sm:$0xff] }
  0x1a   :  { %286 = vmatpush.bf16.msra.mxu2 %v1579_v13  ;;  %v1596_v5 = vld [vmem:[#allocation4 + $0xa8] sm:$0xff]  ;;  %v1603_v6 = vld [vmem:[#allocation4 + $0xe0] sm:$0xff]  ;;  %v1594_v9 = vld [vmem:[#allocation4 + $0x98] sm:$0xff] }
  0x1b   :  { %367 = vmatpush.bf16.msra.mxu3 %v1588_v30  ;;  %v1595_v7 = vld [vmem:[#allocation4 + $0xa0] sm:$0xff]  ;;  %v1601_v10 = vld [vmem:[#allocation4 + $0xd0] sm:$0xff]  ;;  %v1600_v13 = vld [vmem:[#allocation4 + $0xc8] sm:$0xff] }
  0x1c   :  { %193 = vmatpush.bf16.msra.mxu0 %v1562_v11  ;;  %v1593_v11 = vld [vmem:[#allocation4 + $0x90] sm:$0xff]  ;;  %v1620_v28 = vld [vmem:[#allocation2 + $0xe8] sm:$0xff]  ;;  %v1611_v30 = vld [vmem:[#allocation2 + $0xa0] sm:$0xff] }
  0x1d   :  { %206 = vmatpush.bf16.msra.mxu1 %v1570_v12  ;;  %v1613_v22 = vld [vmem:[#allocation2 + $0xb0] sm:$0xff]  ;;  %v1636_v29 = vld [vmem:[#allocation4 + $0x168] sm:$0xff] }
  0x1e   :  { %287 = vmatpush.bf16.msra.mxu2 %v1578_v16  ;;  %v1591_v16 = vld [vmem:[#allocation4 + $0x80] sm:$0xff]  ;;  %v1621_v23 = vld [vmem:[#allocation2 + $0xf0] sm:$0xff]  ;;  %v1644_v53 = vld [vmem:[#allocation4 + $0x1a8] sm:$0xff] }
  0x1f   :  { %368 = vmatpush.bf16.msra.mxu3 %v1587_v31  ;;  %v1619_v31 = vld [vmem:[#allocation2 + $0xe0] sm:$0xff]  ;;  %v1645_v51 = vld [vmem:[#allocation4 + $0x1b0] sm:$0xff] }
  0x20   :  { %194 = vmatpush.bf16.msra.mxu0 %v1561_v14  ;;  %v1592_v14 = vld [vmem:[#allocation4 + $0x88] sm:$0xff] }
  0x21   :  { %207 = vmatpush.bf16.msra.mxu1 %v1569_v15  ;;  %v1599_v15 = vld [vmem:[#allocation4 + $0xc0] sm:$0xff] }
  0x22   :  { %288 = vmatpush.bf16.msra.mxu2 %v1577_v19  ;;  %v1614_v19 = vld [vmem:[#allocation2 + $0xb8] sm:$0xff] }
  0x23   :  { %369 = vmatpush.bf16.msra.mxu3 %v1586_v32  ;;  %v1635_v32 = vld [vmem:[#allocation4 + $0x160] sm:$0xff] }
  0x24   :  { %195 = vmatpush.bf16.msra.mxu0 %v1560_v17 }
  0x25   :  { %208 = vmatpush.bf16.msra.mxu1 %v1568_v18 }
  0x26   :  { %289 = vmatpush.bf16.msra.mxu2 %v1576_v26  ;;  %v1637_v26 = vld [vmem:[#allocation4 + $0x170] sm:$0xff] }
  0x27   :  { %370 = vmatpush.bf16.msra.mxu3 %v1585_v33  ;;  %v1610_v33 = vld [vmem:[#allocation2 + $0x98] sm:$0xff] }
  0x28   :  { %196 = vmatpush.bf16.msra.mxu0 %v1559_v20  ;;  %v1622_v20 = vld [vmem:[#allocation2 + $0xf8] sm:$0xff] }
  0x29   :  { %209 = vmatpush.bf16.msra.mxu1 %v1567_v21  ;;  %v1638_v21 = vld [vmem:[#allocation4 + $0x178] sm:$0xff] }
  0x2a   :  { %290 = vmatpush.bf16.msra.mxu2 %v1575_v27  ;;  %v1612_v27 = vld [vmem:[#allocation2 + $0xa8] sm:$0xff] }
  0x2b   :  { %197 = vmatmul.bf16.vlgmr.msra.gmra.mxu0 %v1786_v24  ;;  %371 = vmatpush.bf16.msra.mxu3 %v1584_v43 }
  0x2c   :  { %210 = vmatmul.bf16.vlgmr.msra.gmra.mxu1 %v1788_v25  ;;  %481 = vmatpush.bf16.msrb.mxu0 %v1606_v0 }
  0x2d   :  { %544 = vmatpush.bf16.msrb.mxu1 %v1598_v1 }
  0x2e   :  { %688 = vmatpush.bf16.msrb.mxu2 %v1614_v19 }
  0x2f   :  { %372 = vmatpush.bf16.msra.mxu3 %v1583_v44  ;;  %v1738_v44 = vmov 1.0|1.0  }
  0x30   :  { %482 = vmatpush.bf16.msrb.mxu0 %v1605_v2 }
  0x31   :  { %545 = vmatpush.bf16.msrb.mxu1 %v1597_v3  ;;  %v1640_v3 = vld [vmem:[#allocation4 + $0x188] sm:$0xff] }
  0x32   :  { %689 = vmatpush.bf16.msrb.mxu2 %v1613_v22  ;;  %v1651_v22 = vld [vmem:[#allocation4 + $0x1e0] sm:$0xff] }
  0x33   :  { %701 = vmatpush.bf16.msrb.mxu3 %v1622_v20  ;;  %v1652_v20 = vld [vmem:[#allocation4 + $0x1e8] sm:$0xff] }
  0x34   :  { %483 = vmatpush.bf16.msrb.mxu0 %v1604_v4  ;;  %v1673_v4 = vld [vmem:[%s1841_s5 + $0x3] ss:$0 sm:$0xff] }
  0x35   :  { %546 = vmatpush.bf16.msrb.mxu1 %v1596_v5 }
  0x36   :  { %690 = vmatpush.bf16.msrb.mxu2 %v1612_v27  ;;  %v1658_v27 = vld [vmem:[#allocation4 + $0x218] sm:$0xff] }
  0x37   :  { %702 = vmatpush.bf16.msrb.mxu3 %v1621_v23  ;;  %v1659_v23 = vld [vmem:[#allocation4 + $0x220] sm:$0xff] }
  0x38   :  { %484 = vmatpush.bf16.msrb.mxu0 %v1603_v6  ;;  %v1624_v6 = vld [vmem:[#allocation4 + $0x108] sm:$0xff] }
  0x39   :  { %547 = vmatpush.bf16.msrb.mxu1 %v1595_v7  ;;  %v1639_v7 = vld [vmem:[#allocation4 + $0x180] sm:$0xff] }
  0x3a   :  { %691 = vmatpush.bf16.msrb.mxu2 %v1611_v30  ;;  %v1672_v30 = vld [vmem:[%s1841_s5 + $0x5] ss:$0 sm:$0xff] }
  0x3b   :  { %703 = vmatpush.bf16.msrb.mxu3 %v1620_v28  ;;  %v1649_v28 = vld [vmem:[#allocation4 + $0x1d0] sm:$0xff] }
  0x3c   :  { %485 = vmatpush.bf16.msrb.mxu0 %v1602_v8 }
  0x3d   :  { %548 = vmatpush.bf16.msrb.mxu1 %v1594_v9 }
  0x3e   :  { %692 = vmatpush.bf16.msrb.mxu2 %v1610_v33 }
  0x3f   :  { %704 = vmatpush.bf16.msrb.mxu3 %v1619_v31 }
  0x40   :  { %486 = vmatpush.bf16.msrb.mxu0 %v1601_v10 }
  0x41   :  { %549 = vmatpush.bf16.msrb.mxu1 %v1593_v11  ;;  %v1623_v11 = vld [vmem:[#allocation4 + $0x100] sm:$0xff] }
  0x44   :  { %487 = vmatpush.bf16.msrb.mxu0 %v1600_v13  ;;  %v1654_v13 = vld [vmem:[#allocation4 + $0x1f8] sm:$0xff] }
  0x45   :  { %550 = vmatpush.bf16.msrb.mxu1 %v1592_v14  ;;  %v1662_v14 = vld [vmem:[#allocation4 + $0x238] sm:$0xff] }
  0x48   :  { %488 = vmatpush.bf16.msrb.mxu0 %v1599_v15 }
  0x49   :  { %551 = vmatpush.bf16.msrb.mxu1 %v1591_v16 }
  0x4d   :  { %865 = vmatpush.bf16.msra.mxu1 %v1638_v21  ;;  %v1660_v21 = vld [vmem:[#allocation4 + $0x228] sm:$0xff] }
  0x51   :  { %866 = vmatpush.bf16.msra.mxu1 %v1637_v26  ;;  %v1650_v26 = vld [vmem:[#allocation4 + $0x1d8] sm:$0xff] }
  0x55   :  { %867 = vmatpush.bf16.msra.mxu1 %v1636_v29  ;;  %v1657_v29 = vld [vmem:[#allocation4 + $0x210] sm:$0xff] }
  0x59   :  { %868 = vmatpush.bf16.msra.mxu1 %v1635_v32 }
  0xa8   :  { %v198_v35 = vpop.f32.mrf.mxu0 }
  0xa9   :  { %v211_v36 = vpop.f32.mrf.mxu1  ;;  %v199_v37 = vadd.f32 %v1669_v34, %v198_v35  ;;  %v1618_v34 = vld [vmem:[#allocation2 + $0xd8] sm:$0xff] }
  0xaa   :  { %v1634_v35 = vld [vmem:[#allocation4 + $0x158] sm:$0xff]  ;;  %705 = vmatpush.bf16.msrb.mxu3 %v1618_v34 }
  0xab   :  { %v212_v38 = vadd.f32 %v211_v36, %v199_v37  ;;  %v1609_v36 = vld [vmem:[#allocation2 + $0x90] sm:$0xff]  ;;  %869 = vmatpush.bf16.msra.mxu1 %v1634_v35 }
  0xac   :  { %v1617_v37 = vld [vmem:[#allocation2 + $0xd0] sm:$0xff]  ;;  %693 = vmatpush.bf16.msrb.mxu2 %v1609_v36  ;;  %v1648_v36 = vld [vmem:[#allocation4 + $0x1c8] sm:$0xff] }
  0xad   :  { %v215_v39 = vmax.f32 %v212_v38, 0.0  ;;  %v1633_v38 = vld [vmem:[#allocation4 + $0x150] sm:$0xff] }
  0xae   :  { %706 = vmatpush.bf16.msrb.mxu3 %v1617_v37  ;;  %v1674_v37 = vld [vmem:[%s1841_s5 + $0x4] ss:$0 sm:$0xff] }
  0xaf   :  { %v232_v40 = vpack.c.bf16 %v215_v39, %v215_v39  ;;  %v1608_v39 = vld [vmem:[#allocation2 + $0x88] sm:$0xff]  ;;  %870 = vmatpush.bf16.msra.mxu1 %v1633_v38 }
  0xb0   :  { %v200_v41 = vpop.f32.mrf.mxu0  ;;  %694 = vmatpush.bf16.msrb.mxu2 %v1608_v39  ;;  %v1656_v39 = vld [vmem:[#allocation4 + $0x208] sm:$0xff] }
  0xb1   :  { %v213_v42 = vpop.f32.mrf.mxu1  ;;  %291 = vmatmul.bf16.vlgmr.msra.gmra.mxu2 %v232_v40  ;;  %v1616_v40 = vld [vmem:[#allocation2 + $0xc8] sm:$0xff] }
  0xb2   :  { %707 = vmatpush.bf16.msrb.mxu3 %v1616_v40  ;;  %v1737_v42 = vmov 0.0  }
 0x134   :  { %v292_v46 = vpop.f32.mrf.mxu2 }
 0x135   :  { %v293_v47 = vadd.f32 %v1670_v45, %v292_v46  ;;  %v1607_v45 = vld [vmem:[#allocation2 + $0x80] sm:$0xff]  ;;  %v1632_v46 = vld [vmem:[#allocation4 + $0x148] sm:$0xff] }
 0x136   :  { %695 = vmatpush.bf16.msrb.mxu2 %v1607_v45  ;;  %871 = vmatpush.bf16.msra.mxu1 %v1632_v46  ;;  %v1675_v46 = vld [vmem:[%s1841_s5 + $0x6] ss:$0 sm:$0xff] }
 0x137   :  { %v296_v48 = vmax.f32 %v293_v47, 0.0  ;;  %v1615_v47 = vld [vmem:[#allocation2 + $0xc0] sm:$0xff] }
 0x138   :  { %708 = vmatpush.bf16.msrb.mxu3 %v1615_v47 }
 0x139   :  { %v314_v49 = vpack.c.bf16 %v296_v48, %v296_v48  ;;  %v1631_v48 = vld [vmem:[#allocation4 + $0x140] sm:$0xff]  ;;  %696 = vmatmul.bf16.vlgmr.msrb.gmra.mxu2 %v1786_v24  ;;  %v1642_v24 = vld [vmem:[#allocation4 + $0x198] sm:$0xff] }
 0x13a   :  { %872 = vmatpush.bf16.msra.mxu1 %v1631_v48 }
 0x13b   :  { %373 = vmatmul.bf16.vlgmr.msra.gmra.mxu3 %v314_v49  ;;  %v1646_v49 = vld [vmem:[#allocation4 + $0x1b8] sm:$0xff] }
 0x13c   :  { %v294_v50 = vpop.f32.mrf.mxu2  ;;  %947 = vmatpush.bf16.msra.mxu2 %v1646_v49  ;;  %1045 = vmatpush.bf16.msra.mxu3 %v1662_v14 }
 0x13d   :  { %v1630_v50 = vld [vmem:[#allocation4 + $0x138] sm:$0xff] }
 0x13e   :  { %783 = vmatpush.bf16.msra.mxu0 %v1630_v50 }
 0x140   :  { %948 = vmatpush.bf16.msra.mxu2 %v1645_v51 }
 0x144   :  { %949 = vmatpush.bf16.msra.mxu2 %v1644_v53 }
 0x14b   :  { %709 = vmatmul.bf16.vlgmr.msrb.gmra.mxu3 %v1788_v25  ;;  %v1641_v25 = vld [vmem:[#allocation4 + $0x190] sm:$0xff] }
 0x1bc   :  { %v697_v5 = vpop.f32.mrf.mxu2 }
 0x1bd   :  { %v698_v8 = vadd.f32 %v1673_v4, %v697_v5 }
 0x1be   :  { %v374_v54 = vpop.f32.mrf.mxu3 }
 0x1bf   :  { %v375_v56 = vadd.f32 %v1671_v52, %v374_v54  ;;  %v1629_v52 = vld [vmem:[#allocation4 + $0x130] sm:$0xff]  ;;  %v1628_v54 = vld [vmem:[#allocation4 + $0x128] sm:$0xff] }
 0x1c0   :  { %784 = vmatpush.bf16.msra.mxu0 %v1629_v52 }
 0x1c1   :  { %1122 = vst [vmem:[%s1842_s6] sm:$0xff] %v375_v56  ;;  %v382_v57 = vadd.f32 %v381_v55, %v375_v56  ;;  %v1643_v55 = vld [vmem:[#allocation4 + $0x1a0] sm:$0xff] }
 0x1c2   :  { %v1627_v56 = vld [vmem:[#allocation4 + $0x120] sm:$0xff]  ;;  %950 = vmatpush.bf16.msra.mxu2 %v1643_v55 }
 0x1c3   :  { %v383_v58 = vsel %vm380_vm0, %v382_v57, -1e+30  ;;  %v1626_v57 = vld [vmem:[#allocation4 + $0x118] sm:$0xff] }
 0x1c4   :  { %384 = vmax.xlane.f32.xlu0 %v383_v58  ;;  %785 = vmatpush.bf16.msra.mxu0 %v1628_v54  ;;  %v699_v16 = vpop.f32.mrf.mxu2  ;;  %v1676_v54 = vld [vmem:[%s1841_s5 + $0x7] ss:$0 sm:$0xff] }
 0x1c6   :  { %v376_v59 = vpop.f32.mrf.mxu3  ;;  %951 = vmatpush.bf16.msra.mxu2 %v1642_v24 }
 0x1c7   :  { %v494_v59 = vld [vmem:[%s1838_s2] sm:$0xff] }
 0x1c8   :  { %786 = vmatpush.bf16.msra.mxu0 %v1627_v56 }
 0x1ca   :  { %952 = vmatpush.bf16.msra.mxu2 %v1641_v25 }
 0x1cc   :  { %787 = vmatpush.bf16.msra.mxu0 %v1626_v57 }
 0x1ce   :  { %953 = vmatpush.bf16.msra.mxu2 %v1640_v3  ;;  %v710_v9 = vpop.f32.mrf.mxu3 }
 0x1cf   :  { %v711_v10 = vadd.f32 %v710_v9, %v698_v8 }
 0x1d2   :  { %954 = vmatpush.bf16.msra.mxu2 %v1639_v7 }
 0x1d6   :  { %v712_v19 = vpop.f32.mrf.mxu3 }
 0x237   :  { %v385_v60 = vpop.xlane.xlu0 %384 }
 0x238   :  { %v386_v61 = vsub.f32 %v383_v58, %v385_v60  ;;  %v1625_v58 = vld [vmem:[#allocation4 + $0x110] sm:$0xff] }
 0x239   :  { %788 = vmatpush.bf16.msra.mxu0 %v1625_v58 }
 0x23a   :  { %v387_v62 = vmul.f32 1.442695, %v386_v61 }
 0x23c   :  { %1677 = vpow2.f32 %v387_v62 }
 0x23d   :  { %789 = vmatpush.bf16.msra.mxu0 %v1624_v6 }
 0x241   :  { %790 = vmatpush.bf16.msra.mxu0 %v1623_v11 }
 0x242   :  { %v1678_v63 = vpop.eup %1677 }
 0x243   :  { %389 = vadd.xlane.f32.xlu0 %v1678_v63 }
 0x2b6   :  { %v390_v12 = vpop.xlane.xlu0 %389 }
 0x2b7   :  { %1679 = vrcp.f32 %v390_v12  ;;  %v714_v12 = vmax.f32 %v711_v10, 0.0 }
 0x2b9   :  { %v732_v15 = vpack.c.bf16 %v714_v12, %v714_v12 }
 0x2bd   :  { %v1680_v17 = vpop.eup %1679 }
 0x2be   :  { %v392_v18 = vmul.f32 %v1680_v17, %v1678_v63  ;;  %v1653_v17 = vld [vmem:[#allocation4 + $0x1f0] sm:$0xff] }
 0x2c0   :  { %393 = vmax.xlane.f32.xlu1 %v392_v18 }
 0x333   :  { %v394_v41 = vpop.xlane.xlu1 %393 }
 0x334   :  { %vm395_vm1 = vcmp.ge.f32.partialorder %v392_v18, %v394_v41  ;;  %v1661_v18 = vld [vmem:[#allocation4 + $0x230] sm:$0xff]  ;;  %v1647_v41 = vld [vmem:[#allocation4 + $0x1c0] sm:$0xff] }
 0x335   :  { %v1263_v43 = vsel %vm395_vm1, 1.0, %v1737_v42  ;;  %vm1296_vm2 = vmpackc.low %vm395_vm1, %vm395_vm1  ;;  %1046 = vmatpush.bf16.msra.mxu3 %v1661_v18 }
 0x336   :  { %1556 = vst [vmem:[%s1842_s6 + $0x8] sm:$0xff] %v1263_v43  ;;  %1297 = vmatmul.msk.bf16.vlgmr.msrb.gmra.mxu0 %vm1296_vm2, %v1738_v44  ;;  %1331 = vmatmul.msk.bf16.vlgmr.msrb.gmra.mxu1 %vm1296_vm2, %v1738_v44  ;;  %v1655_v43 = vld [vmem:[#allocation4 + $0x200] sm:$0xff] }
 0x337   :  { %1106 = vmatpush.bf16.msrb.mxu0 %v1654_v13 }
 0x339   :  { %1047 = vmatpush.bf16.msra.mxu3 %v1660_v21 }
 0x33b   :  { %1107 = vmatpush.bf16.msrb.mxu0 %v1653_v17 }
 0x33d   :  { %1048 = vmatpush.bf16.msra.mxu3 %v1659_v23 }
 0x33f   :  { %1108 = vmatpush.bf16.msrb.mxu0 %v1652_v20 }
 0x341   :  { %1049 = vmatpush.bf16.msra.mxu3 %v1658_v27 }
 0x343   :  { %1109 = vmatpush.bf16.msrb.mxu0 %v1651_v22 }
 0x345   :  { %1050 = vmatpush.bf16.msra.mxu3 %v1657_v29 }
 0x346   :  { %791 = vmatmul.bf16.vlgmr.msra.gmra.mxu0 %v732_v15 }
 0x347   :  { %1110 = vmatpush.bf16.msrb.mxu0 %v1650_v26 }
 0x349   :  { %1051 = vmatpush.bf16.msra.mxu3 %v1656_v39 }
 0x34b   :  { %1111 = vmatpush.bf16.msrb.mxu0 %v1649_v28 }
 0x34d   :  { %1052 = vmatpush.bf16.msra.mxu3 %v1655_v43 }
 0x34f   :  { %1112 = vmatpush.bf16.msrb.mxu0 %v1648_v36 }
 0x353   :  { %1113 = vmatpush.bf16.msrb.mxu0 %v1647_v41 }
 0x3b3   :  { %v490_v60 = vpop.f32.mrf.mxu0  ;;  %v553_v61 = vpop.f32.mrf.mxu1 }
 0x3b4   :  { %v495_v62 = vmul.f32 %v494_v59, %v490_v60 }
 0x3b6   :  { %v554_v63 = vadd.f32 %v553_v61, %v495_v62 }
 0x3b8   :  { %v814_v0 = vpack.c.bf16 %v554_v63, %v554_v63  ;;  %1557 = vst [vmem:[%s1842_s6 + $0x10] sm:$0xff] %v554_v63 }
 0x3ba   :  { %873 = vmatmul.bf16.vlgmr.msra.gmra.mxu1 %v814_v0 }
 0x3bb   :  { %v492_v1 = vpop.f32.mrf.mxu0  ;;  %v555_v2 = vpop.f32.mrf.mxu1 }
 0x3c3   :  { %v792_v38 = vpop.f32.mrf.mxu0 }
 0x3c4   :  { %v793_v40 = vadd.f32 %v1674_v37, %v792_v38 }
 0x3c6   :  { %v796_v42 = vmax.f32 %v793_v40, 0.0 }
 0x3c8   :  { %v961_v44 = vpack.c.bf16 %v796_v42, %v796_v42 }
 0x3ca   :  { %1114 = vmatmul.bf16.vlgmr.msrb.gmra.mxu0 %v961_v44 }
 0x3cb   :  { %v794_v45 = vpop.f32.mrf.mxu0 }
 0x437   :  { %v874_v31 = vpop.f32.mrf.mxu1 }
 0x438   :  { %v875_v32 = vadd.f32 %v1672_v30, %v874_v31 }
 0x43a   :  { %v878_v33 = vmax.f32 %v875_v32, 0.0 }
 0x43c   :  { %v896_v34 = vpack.c.bf16 %v878_v33, %v878_v33 }
 0x43e   :  { %955 = vmatmul.bf16.vlgmr.msra.gmra.mxu2 %v896_v34 }
 0x43f   :  { %v876_v35 = vpop.f32.mrf.mxu1 }
 0x447   :  { %v1115_v52 = vpop.f32.mrf.mxu0 }
 0x44f   :  { %v1117_v53 = vpop.f32.mrf.mxu0 }
 0x4c1   :  { %v956_v47 = vpop.f32.mrf.mxu2 }
 0x4c2   :  { %v957_v48 = vadd.f32 %v1675_v46, %v956_v47 }
 0x4c4   :  { %v960_v49 = vmax.f32 %v957_v48, 0.0 }
 0x4c6   :  { %v979_v50 = vpack.c.bf16 %v960_v49, %v960_v49 }
 0x4c8   :  { %1053 = vmatmul.bf16.vlgmr.msra.gmra.mxu3 %v979_v50 }
 0x4c9   :  { %v958_v51 = vpop.f32.mrf.mxu2 }
 0x54b   :  { %v1054_v55 = vpop.f32.mrf.mxu3 }
 0x54c   :  { %v1116_v56 = vadd.f32 %v1115_v52, %v1054_v55 }
 0x54e   :  { %v1121_v24 = vadd.f32 %v1676_v54, %v1116_v56 }
 0x550   :  { %1558 = vst [vmem:[%s1842_s6 + $0x18] sm:$0xff] %v1121_v24 }
 0x553   :  { %v1056_v57 = vpop.f32.mrf.mxu3 }
 0x554   :  { %1133 = vsyncpa [#allocation3], 1 }
 0x555   :  { %1134 = vsyncpa [#allocation5], 1 }

</bundles_post_ra>
